<compile_context>
chip_gen: v6e
topology: v6e:2x2x1
jax: 0.10.0
libtpu: 0.0.40
codegen_flags: <defaults>
</compile_context>

<pallas_src>
import functools

import jax
import jax.numpy as jnp
from jax.experimental import pallas as pl
from jax.experimental.pallas import tpu as pltpu

LANES = 128
SUBLANES = 8
MAX_TILE_ROWS = 8192                 # 8192 x 128 f32 = 4 MiB per input per buffer
VMEM_LIMIT_BYTES = 32 * 1024 * 1024  # safe on v5e/v6e (128 MiB) and v7x (64 MiB)


def _sublane_pack(dtype) -> int:
    """Sublane packing requirement for a dtype: f32 -> 8, bf16 -> 16, int8 -> 32."""
    return max(SUBLANES, 32 // jnp.dtype(dtype).itemsize)


def _inert_pad_value(dtype):
    """Pad value for preds whose sigmoid is exactly 0 after upcast to f32."""
    if jnp.issubdtype(dtype, jnp.floating):
        return jnp.finfo(dtype).min
    return jnp.iinfo(dtype).min


def _dice_partial_kernel(p_ref, t_ref, num_ref, den_ref, *,
                         tile_rows, rows_valid, needs_mask):
    """Accumulate per-(sublane, lane) partials of sum(sigmoid(p)*t) and
    sum(sigmoid(p)+t) into the VMEM-resident (8, 128) output blocks."""
    k = pl.program_id(0)

    @pl.when(k == 0)
    def _init():
        num_ref[...] = jnp.zeros_like(num_ref)
        den_ref[...] = jnp.zeros_like(den_ref)

    p = p_ref[...].astype(jnp.float32)
    t = t_ref[...].astype(jnp.float32)
    # sigmoid(x) == 0.5 * tanh(0.5 * x) + 0.5 : a single EUP op per vreg.
    sp = 0.5 * jnp.tanh(0.5 * p) + 0.5

    if needs_mask:
        # The last grid block sticks out past the (lightly padded) row count;
        # that region holds garbage, so select it away.  Pure VPU work.
        rid = (jax.lax.broadcasted_iota(jnp.int32, (tile_rows, LANES), 0)
               + k * tile_rows)
        valid = rid < rows_valid
        sp = jnp.where(valid, sp, 0.0)
        t = jnp.where(valid, t, 0.0)

    # (tile_rows, 128) -> (tile_rows//8, 8, 128); sum over axis 0 is a chain of
    # full-vreg adds (no cross-lane / XLU work inside the grid loop).
    prod = (sp * t).reshape(tile_rows // SUBLANES, SUBLANES, LANES)
    ssum = (sp + t).reshape(tile_rows // SUBLANES, SUBLANES, LANES)
    num_ref[...] += jnp.sum(prod, axis=0)
    den_ref[...] += jnp.sum(ssum, axis=0)


def dice_loss(preds, targets, smooth=1.0, *, max_tile_rows=MAX_TILE_ROWS):
    """Pallas TPU implementation of DiceLoss.forward. Returns an f32 scalar."""
    assert preds.shape == targets.shape
    n = preds.size
    assert n > 0

    pack = max(_sublane_pack(preds.dtype), _sublane_pack(targets.dtype))
    rows = pl.cdiv(pl.cdiv(n, LANES), pack) * pack            # padded row count

    tile_rows = min(max_tile_rows, rows)
    tile_rows = pl.cdiv(tile_rows, pack) * pack               # keep (pack,128) legal
    num_steps = pl.cdiv(rows, tile_rows)
    needs_mask = (rows % tile_rows) != 0                      # ragged last block

    # Pad only to the next (pack * 128) boundary (a few KiB at most).  Padded
    # preds map to sigmoid == 0 and padded targets are 0, so they are inert.
    pad = rows * LANES - n
    p_flat = preds.reshape(-1)
    t_flat = targets.reshape(-1)
    if pad > 0:
        p_flat = jnp.pad(p_flat, (0, pad),
                         constant_values=_inert_pad_value(preds.dtype))
        t_flat = jnp.pad(t_flat, (0, pad))
    p2 = p_flat.reshape(rows, LANES)
    t2 = t_flat.reshape(rows, LANES)

    in_spec = pl.BlockSpec((tile_rows, LANES), lambda k: (k, 0))
    out_spec = pl.BlockSpec((SUBLANES, LANES), lambda k: (0, 0))

    kernel = functools.partial(_dice_partial_kernel, tile_rows=tile_rows,
                               rows_valid=rows, needs_mask=needs_mask)

    bytes_accessed = (p2.size * p2.dtype.itemsize
                      + t2.size * t2.dtype.itemsize
                      + 2 * SUBLANES * LANES * 4)
    cost = pl.CostEstimate(flops=6 * n, transcendentals=n,
                           bytes_accessed=bytes_accessed)

    num_part, den_part = pl.pallas_call(
        kernel,
        out_shape=(jax.ShapeDtypeStruct((SUBLANES, LANES), jnp.float32),
                   jax.ShapeDtypeStruct((SUBLANES, LANES), jnp.float32)),
        grid_spec=pltpu.PrefetchScalarGridSpec(
            num_scalar_prefetch=0,
            grid=(num_steps,),
            in_specs=[in_spec, in_spec],
            out_specs=[out_spec, out_spec],
        ),
        compiler_params=pltpu.CompilerParams(
            dimension_semantics=("arbitrary",),
            vmem_limit_bytes=VMEM_LIMIT_BYTES,
        ),
        cost_estimate=cost,
    )(p2, t2)

    # Tiny scalar epilogue (2 x 1024 floats) outside the kernel.
    num_total = jnp.sum(num_part)
    den_total = jnp.sum(den_part)
    smooth_f = jnp.float32(smooth)
    return 1.0 - (2.0 * num_total + smooth_f) / (den_total + smooth_f)


def _dice_loss_ref(preds, targets, smooth=1.0):
    p = jax.nn.sigmoid(preds.astype(jnp.float32))
    t = targets.astype(jnp.float32)
    num = 2.0 * jnp.sum(p * t) + smooth
    den = jnp.sum(p + t) + smooth
    return 1.0 - num / den


if __name__ == "__main__":
    key = jax.random.PRNGKey(0)
    k1, k2, k3, k4 = jax.random.split(key, 4)

    # Primary case: NCHW segmentation logits + binary mask, both f32.
    preds = jax.random.normal(k1, (2, 4, 16, 16), dtype=jnp.float32)
    targets = (jax.random.uniform(k2, (2, 4, 16, 16)) > 0.5).astype(jnp.float32)
    out = jax.block_until_ready(dice_loss(preds, targets, smooth=1.0))
    ref = _dice_loss_ref(preds, targets, smooth=1.0)
    assert jnp.allclose(out, ref, atol=1e-5, rtol=1e-5), (out, ref)

    # Ragged case: exercises the small lane pad + in-kernel tail mask
    # (tile smaller than, and not dividing, the padded row count).
    p_b = jax.random.normal(k3, (3, 1000), dtype=jnp.float32)
    t_b = (jax.random.uniform(k4, (3, 1000)) > 0.5).astype(jnp.float32)
    out_b = jax.block_until_ready(dice_loss(p_b, t_b, smooth=1.0,
                                            max_tile_rows=16))
    ref_b = _dice_loss_ref(p_b, t_b, smooth=1.0)
    assert jnp.allclose(out_b, ref_b, atol=1e-5, rtol=1e-5), (out_b, ref_b)

    # Narrow mixed dtypes: bf16 logits + int8 mask (upcast happens in VMEM).
    p_c = jax.random.normal(k3, (2, 3, 17, 13), dtype=jnp.bfloat16)
    t_c = (jax.random.uniform(k4, (2, 3, 17, 13)) > 0.5).astype(jnp.int8)
    out_c = jax.block_until_ready(dice_loss(p_c, t_c, smooth=1.0))
    ref_c = _dice_loss_ref(p_c, t_c, smooth=1.0)
    assert jnp.allclose(out_c, ref_c, atol=1e-5, rtol=1e-5), (out_c, ref_c)

    print("KERNEL_OK")
</pallas_src>

<mosaic_0001>
module attributes {stable_mosaic.version = 11 : i64} {
  func.func @_dice_partial_kernel(%arg0: i32, %arg1: memref<16x128xf32, #tpu.memory_space<vmem>>, %arg2: memref<16x128xf32, #tpu.memory_space<vmem>>, %arg3: memref<8x128xf32, #tpu.memory_space<vmem>>, %arg4: memref<8x128xf32, #tpu.memory_space<vmem>>) attributes {dimension_semantics = [#tpu.dimension_semantics<arbitrary>], iteration_bounds = array<i64: 1>, scalar_prefetch = 0 : i64, scratch_operands = 0 : i64, tpu.core_type = #tpu.core_type<tc>, window_params = [{transform_indices = @transform_0, window_bounds = array<i64: 16, 128>}, {transform_indices = @transform_1, window_bounds = array<i64: 16, 128>}, {pipeline_mode = #tpu.pipeline_mode<synchronous>, transform_indices = @transform_2, window_bounds = array<i64: 8, 128>}, {pipeline_mode = #tpu.pipeline_mode<synchronous>, transform_indices = @transform_3, window_bounds = array<i64: 8, 128>}]} {
    %c0_i32 = arith.constant 0 : i32
    %0 = arith.cmpi eq, %arg0, %c0_i32 : i32
    %1 = arith.extui %0 : i1 to i32
    %c0_i32_0 = arith.constant 0 : i32
    %2 = arith.cmpi ne, %1, %c0_i32_0 : i32
    scf.if %2 {
      %cst_16 = arith.constant 0.000000e+00 : f32
      %24 = vector.broadcast %cst_16 : f32 to vector<8x128xf32>
      %c0_17 = arith.constant 0 : index
      %c0_18 = arith.constant 0 : index
      %25 = vector.load %arg3[%c0_17, %c0_18] : memref<8x128xf32, #tpu.memory_space<vmem>>, vector<8x128xf32>
      tpu.vector_store %arg3[%c0_17, %c0_18], %24 {strides = array<i32>} : memref<8x128xf32, #tpu.memory_space<vmem>>, vector<8x128xf32>,
      %cst_19 = arith.constant 0.000000e+00 : f32
      %26 = vector.broadcast %cst_19 : f32 to vector<8x128xf32>
      %c0_20 = arith.constant 0 : index
      %c0_21 = arith.constant 0 : index
      %27 = vector.load %arg4[%c0_20, %c0_21] : memref<8x128xf32, #tpu.memory_space<vmem>>, vector<8x128xf32>
      tpu.vector_store %arg4[%c0_20, %c0_21], %26 {strides = array<i32>} : memref<8x128xf32, #tpu.memory_space<vmem>>, vector<8x128xf32>,
    } else {
    }
    %c0 = arith.constant 0 : index
    %c0_1 = arith.constant 0 : index
    %3 = vector.load %arg1[%c0, %c0_1] : memref<16x128xf32, #tpu.memory_space<vmem>>, vector<16x128xf32>
    %c0_2 = arith.constant 0 : index
    %c0_3 = arith.constant 0 : index
    %4 = vector.load %arg2[%c0_2, %c0_3] : memref<16x128xf32, #tpu.memory_space<vmem>>, vector<16x128xf32>
    %cst = arith.constant 5.000000e-01 : f32
    %5 = vector.broadcast %cst : f32 to vector<16x128xf32>
    %6 = arith.mulf %5, %3 : vector<16x128xf32>
    %7 = math.tanh %6 : vector<16x128xf32>
    %cst_4 = arith.constant 5.000000e-01 : f32
    %8 = vector.broadcast %cst_4 : f32 to vector<16x128xf32>
    %9 = arith.mulf %8, %7 : vector<16x128xf32>
    %cst_5 = arith.constant 5.000000e-01 : f32
    %10 = vector.broadcast %cst_5 : f32 to vector<16x128xf32>
    %11 = arith.addf %9, %10 : vector<16x128xf32>
    %12 = arith.mulf %11, %4 : vector<16x128xf32>
    %13 = vector.shape_cast %12 : vector<16x128xf32> to vector<2x8x128xf32>
    %14 = arith.addf %11, %4 : vector<16x128xf32>
    %15 = vector.shape_cast %14 : vector<16x128xf32> to vector<2x8x128xf32>
    %c0_6 = arith.constant 0 : index
    %c0_7 = arith.constant 0 : index
    %16 = vector.load %arg3[%c0_6, %c0_7] : memref<8x128xf32, #tpu.memory_space<vmem>>, vector<8x128xf32>
    %cst_8 = arith.constant dense<0.000000e+00> : vector<8x128xf32>
    %17 = vector.multi_reduction <add>, %13, %cst_8 [0] : vector<2x8x128xf32> to vector<8x128xf32>
    %18 = arith.addf %16, %17 : vector<8x128xf32>
    %c0_9 = arith.constant 0 : index
    %c0_10 = arith.constant 0 : index
    %19 = vector.load %arg3[%c0_9, %c0_10] : memref<8x128xf32, #tpu.memory_space<vmem>>, vector<8x128xf32>
    tpu.vector_store %arg3[%c0_9, %c0_10], %18 {strides = array<i32>} : memref<8x128xf32, #tpu.memory_space<vmem>>, vector<8x128xf32>,
    %c0_11 = arith.constant 0 : index
    %c0_12 = arith.constant 0 : index
    %20 = vector.load %arg4[%c0_11, %c0_12] : memref<8x128xf32, #tpu.memory_space<vmem>>, vector<8x128xf32>
    %cst_13 = arith.constant dense<0.000000e+00> : vector<8x128xf32>
    %21 = vector.multi_reduction <add>, %15, %cst_13 [0] : vector<2x8x128xf32> to vector<8x128xf32>
    %22 = arith.addf %20, %21 : vector<8x128xf32>
    %c0_14 = arith.constant 0 : index
    %c0_15 = arith.constant 0 : index
    %23 = vector.load %arg4[%c0_14, %c0_15] : memref<8x128xf32, #tpu.memory_space<vmem>>, vector<8x128xf32>
    tpu.vector_store %arg4[%c0_14, %c0_15], %22 {strides = array<i32>} : memref<8x128xf32, #tpu.memory_space<vmem>>, vector<8x128xf32>,
    return
  }
  func.func @transform_0(%arg0: i32) -> (i32, i32) {
    %c0_i32 = arith.constant 0 : i32
    %c0_i32_0 = arith.constant 0 : i32
    return %arg0, %c0_i32 : i32, i32
  }
  func.func @transform_1(%arg0: i32) -> (i32, i32) {
    %c0_i32 = arith.constant 0 : i32
    %c0_i32_0 = arith.constant 0 : i32
    return %arg0, %c0_i32 : i32, i32
  }
  func.func @transform_2(%arg0: i32) -> (i32, i32) {
    %c0_i32 = arith.constant 0 : i32
    %c0_i32_0 = arith.constant 0 : i32
    %c0_i32_1 = arith.constant 0 : i32
    return %c0_i32, %c0_i32_0 : i32, i32
  }
  func.func @transform_3(%arg0: i32) -> (i32, i32) {
    %c0_i32 = arith.constant 0 : i32
    %c0_i32_0 = arith.constant 0 : i32
    %c0_i32_1 = arith.constant 0 : i32
    return %c0_i32, %c0_i32_0 : i32, i32
  }
}

</mosaic_0001>

<bundles_post_ra>
// kernel: tpu_custom_call.1
= control target key start
LH: loop header
LB: loop body
LE: loop exit
PB: predicated region body
PF: predicated region fallthrough
CT: control target
= control target key end

     0   :  { %9 = vsyncpa [#allocation3], 0  ;;  %s240_s0 = inlined_call_operand.hbm [shape: f32[16,128], index: 0, kind: input, shape index: {}]   ;;  %s241_s1 = inlined_call_operand.hbm [shape: f32[16,128], index: 1, kind: input, shape index: {}]   ;;  %s242_s2 = inlined_call_operand.hbm [shape: f32[8,128], index: 2, kind: output, shape index: {0}]   ;;  %s243_s3 = inlined_call_operand.hbm [shape: f32[8,128], index: 3, kind: output, shape index: {1}]  }
   0x1   :  { %10 = vsyncpa [#allocation6], 0 }
   0x2   :  { %11 = vsyncpa [#allocation4], 0 }
   0x3   :  { %12 = vsyncpa [#allocation9], 0  ;;  %s202_s12 = smov [#allocation2]  }
   0x4   :  { %s18_s13 = sshll.u32 %s202_s12, 4  ;;  %s19_s13 = int_to_ptr.vmem [resolvable:$true] %s18_s13 }
   0x5   :  { %s122_s14 = scalar_lea.vmem %s19_s13, 256  ;;  %p127_p1 = scmp.lt.s32.totalorder %s19_s13, %s19_s13 }
   0x6   :  { %p123_p0 = scmp.ne.s32.totalorder %s19_s13, %s122_s14  ;;  %p128_p2 = scmp.lt.s32.totalorder %s122_s14, %s122_s14 }
   0x8   :  { %p129_p3 = por %p128_p2, %p127_p1 }
   0xa   :  { %p130_p4 = pnand %p129_p3, %p123_p0 }
   0xc   :  { %133 = shalt.err (!%p130_p4)
}
   0xd   :  { %s203_s15 = smov 128   ;;  %s204_s16 = smov 8  }
   0xe   :  { %24 = dma.hbm_to_vmem [thread:$0]  %s240_s0, 256, %s19_s13, [#allocation3], %s203_s15, %s203_s15, %s204_s16  }
   0xf   :  { %s205_s19 = smov [#allocation5]  }
  0x10   :  { %s30_s20 = sshll.u32 %s205_s19, 4  ;;  %s31_s20 = int_to_ptr.vmem [resolvable:$true] %s30_s20 }
  0x11   :  { %s142_s21 = scalar_lea.vmem %s31_s20, 256  ;;  %p147_p6 = scmp.lt.s32.totalorder %s31_s20, %s31_s20 }
  0x12   :  { %p143_p5 = scmp.ne.s32.totalorder %s31_s20, %s142_s21  ;;  %p148_p7 = scmp.lt.s32.totalorder %s142_s21, %s142_s21 }
  0x14   :  { %p149_p8 = por %p148_p7, %p147_p6 }
  0x16   :  { %p150_p9 = pnand %p149_p8, %p143_p5 }
  0x18   :  { %153 = shalt.err (!%p150_p9)
}
  0x19   :  { %36 = dma.hbm_to_vmem [thread:$0]  %s241_s1, 256, %s31_s20, [#allocation6], %s203_s15, %s203_s15, %s204_s16  }
  0x1a   :  { %194 = dma.done.wait [#allocation3], 256  }
  0x1b   :  { %195 = vsyncadd [#allocation3], 4294967040 }
  0x1c   :  { %196 = dma.done.wait [#allocation6], 256  }
  0x1d   :  { %197 = vsyncadd [#allocation6], 4294967040  ;;  %v49_v0 = vld [vmem:[#allocation2] sm:$0xff]  ;;  %v50_v1 = vld [vmem:[#allocation2 + $0x8] sm:$0xff]  ;;  %s206_s0 = smov [#allocation7]   ;;  %s207_s24 = smov [#allocation8]  }
  0x1e   :  { %v53_v2 = vmul.f32 0.5, %v49_v0  ;;  %v54_v3 = vmul.f32 0.5, %v50_v1  ;;  %v51_v7 = vld [vmem:[#allocation5] sm:$0xff]  ;;  %v52_v9 = vld [vmem:[#allocation5 + $0x8] sm:$0xff]  ;;  %s79_s1 = sshll.u32 %s206_s0, 4  ;;  %s89_s25 = sshll.u32 %s207_s24, 4  ;;  %s80_s1 = int_to_ptr.vmem [resolvable:$true] %s79_s1  ;;  %s90_s25 = int_to_ptr.vmem [resolvable:$true] %s89_s25 }
  0x1f   :  { %s154_s26 = scalar_lea.vmem %s80_s1, 128  ;;  %p159_p11 = scmp.lt.s32.totalorder %s80_s1, %s80_s1 }
  0x20   :  { %110 = vtanh.f32 %v53_v2  ;;  %p155_p10 = scmp.ne.s32.totalorder %s80_s1, %s154_s26  ;;  %p160_p12 = scmp.lt.s32.totalorder %s154_s26, %s154_s26 }
  0x21   :  { %112 = vtanh.f32 %v54_v3 }
  0x22   :  { %p161_p13 = por %p160_p12, %p159_p11 }
  0x24   :  { %p162_p0 = pnand %p161_p13, %p155_p10 }
  0x2d   :  { %v111_v4 = vpop.eup %110 }
  0x2e   :  { %v113_v5 = vpop.eup %112  ;;  %v57_v6 = vmul.f32 0.5, %v111_v4 }
  0x2f   :  { %v58_v8 = vmul.f32 0.5, %v113_v5 }
  0x30   :  { %v59_v10 = vadd.f32 0.5, %v57_v6 }
  0x31   :  { %v60_v11 = vadd.f32 0.5, %v58_v8 }
  0x32   :  { %v61_v12 = vmul.f32 %v59_v10, %v51_v7  ;;  %v63_v13 = vadd.f32 %v59_v10, %v51_v7 }
  0x33   :  { %v62_v14 = vmul.f32 %v60_v11, %v52_v9  ;;  %v64_v15 = vadd.f32 %v60_v11, %v52_v9 }
  0x35   :  { %v66_v16 = vadd.f32 %v62_v14, %v61_v12  ;;  %v70_v17 = vadd.f32 %v64_v15, %v63_v13 }
  0x37   :  { %68 = vst [vmem:[#allocation7] sm:$0xff] %v66_v16  ;;  %72 = vst [vmem:[#allocation8] sm:$0xff] %v70_v17 }
  0x38   :  { %165 = shalt.err (!%p162_p0)
}
  0x39   :  { %82 = dma.vmem_to_hbm [thread:$0]  %s80_s1, 128, %s242_s2, [#allocation4]  }
  0x3a   :  { %s174_s29 = scalar_lea.vmem %s90_s25, 128  ;;  %p179_p2 = scmp.lt.s32.totalorder %s90_s25, %s90_s25 }
  0x3b   :  { %p175_p1 = scmp.ne.s32.totalorder %s90_s25, %s174_s29  ;;  %p180_p3 = scmp.lt.s32.totalorder %s174_s29, %s174_s29 }
  0x3d   :  { %p181_p4 = por %p180_p3, %p179_p2 }
  0x3f   :  { %p182_p5 = pnand %p181_p4, %p175_p1 }
  0x41   :  { %185 = shalt.err (!%p182_p5)
}
  0x42   :  { %92 = dma.vmem_to_hbm [thread:$0]  %s90_s25, 128, %s243_s3, [#allocation9]  }
  0x43   :  { %198 = dma.done.wait [#allocation4], 128  }
  0x44   :  { %199 = vsyncadd [#allocation4], 4294967168 }
  0x45   :  { %200 = dma.done.wait [#allocation9], 128  }
  0x46   :  { %201 = vsyncadd [#allocation9], 4294967168 }
  0x47   :  { %99 = vsyncpa [#allocation3], 1 }
  0x48   :  { %100 = vsyncpa [#allocation6], 1 }
  0x49   :  { %101 = vsyncpa [#allocation4], 1 }
  0x4a   :  { %102 = vsyncpa [#allocation9], 1 }

</bundles_post_ra>
